<compile_context>
chip_gen: v6e
topology: v6e:2x2x1
jax: 0.10.0
libtpu: 0.0.40
codegen_flags: <defaults>
</compile_context>

<pallas_src>
import functools

import jax
import jax.numpy as jnp
from jax.experimental import pallas as pl
from jax.experimental.pallas import tpu as pltpu

CIN_PAD = 8  # channels padded to one native f32 sublane tile -> aligned in-kernel im2col


# ----------------------------- Pallas kernels -----------------------------

def _conv_relu_pool_kernel(xp_ref, wt_ref, b_ref, pooled_ref, *, H, W, inv_hw):
    """Fused 3x3 conv (stride 1, pad 1) + bias + ReLU + global average pool.

    Transposed (channels-on-sublanes) formulation:
      xp_ref:     (H+2, 8, W+2)  zero-padded input, channels padded 3->8, bf16
      wt_ref:     (tn, 72)       transposed conv weight tile (Cout tile, K = 9*8), bf16
      b_ref:      (tn, 1)        bias column, f32
      pooled_ref: (tn, 1)        pooled output for this (batch, Cout-tile), f32
    """
    ones_w = jnp.ones((W, 1), jnp.float32)          # hoisted out of the row loop
    pooled_ref[...] = jnp.zeros_like(pooled_ref)    # running spatial sum

    @pl.loop(0, H)
    def _row(r):
        # ---- in-kernel im2col for output row r (aligned sublane stacking only) ----
        # patch_t[(kh*3+kw)*8 + c, col] = x[c, r+kh-1, col+kw-1]  (zero padded)
        pieces = []
        for kh in range(3):
            slab = xp_ref[r + kh].astype(jnp.float32)     # (8, W+2)
            for kw in range(3):
                pieces.append(slab[:, kw:kw + W])         # (8, W): one sublane tile
        patch_t = jnp.concatenate(pieces, axis=0)         # (72, W) == (K, pixels)

        # ---- Cout-tile x pixel matmul: bf16 operands, f32 accumulation (MXU) ------
        y = jnp.dot(wt_ref[...], patch_t.astype(jnp.bfloat16),
                    preferred_element_type=jnp.float32)   # (tn, W) f32
        y = jnp.maximum(y + b_ref[...], 0.0)              # bias + ReLU (VPU, f32)

        # ---- spatial reduction as a ones-matmul on the MXU (not a VPU sum) --------
        pooled_ref[...] += jnp.dot(y, ones_w, preferred_element_type=jnp.float32)

    pooled_ref[...] *= inv_hw                              # running sum -> mean


def _head_kernel(pooled_ref, eca_ref, w1_ref, b1_ref, w2_ref, b2_ref, out_ref):
    """ECA channel attention + classifier MLP (lane-padded classes).

    pooled_ref: (TB, C)   pooled backbone features, f32
    eca_ref:    (3,)      SMEM scalars -- 3-tap conv1d weights
    w1/b1:      (C, 256) bf16 / (1, 256) f32
    w2/b2:      (256, NCP) bf16 / (1, NCP) f32   (NCP = classes padded to 128)
    out_ref:    (TB, NCP) f32
    """
    p = pooled_ref[...]                          # (TB, C) f32
    c = p.shape[-1]
    w_lo, w_mid, w_hi = eca_ref[0], eca_ref[1], eca_ref[2]

    # ECA: sigmoid(conv1d_k3_pad1(pooled)) via lane rolls + edge masks (VPU/XLU),
    # instead of a dense C x C band matrix on the MXU.
    p_prev = pltpu.roll(p, 1, 1)                 # p[:, ch-1]  (wraps at ch=0)
    p_next = pltpu.roll(p, c - 1, 1)             # p[:, ch+1]  (wraps at ch=C-1)
    lane = jax.lax.broadcasted_iota(jnp.int32, p.shape, 1)
    pre = (w_lo * jnp.where(lane == 0, 0.0, p_prev)
           + w_mid * p
           + w_hi * jnp.where(lane == c - 1, 0.0, p_next))
    feat = p * jax.nn.sigmoid(pre)               # backbone features

    # classifier: Linear -> ReLU -> Dropout(eval: identity) -> Linear, bf16 MXU matmuls
    h = jnp.maximum(
        jnp.dot(feat.astype(jnp.bfloat16), w1_ref[...],
                preferred_element_type=jnp.float32) + b1_ref[...], 0.0)
    out_ref[...] = (jnp.dot(h.astype(jnp.bfloat16), w2_ref[...],
                            preferred_element_type=jnp.float32) + b2_ref[...])


# ------------------------------ JAX glue -----------------------------------

def _round_up(x, m):
    return ((x + m - 1) // m) * m


def clothing_classifier_forward(x_nchw, conv_w, conv_b, eca_w, w1, b1, w2, b2):
    B, Cin, H, W = x_nchw.shape
    KH, KW, _, Cout = conv_w.shape
    hidden = w1.shape[-1]
    num_classes = w2.shape[-1]
    assert (KH, KW) == (3, 3) and Cin <= CIN_PAD
    HW = H * W
    Kp = KH * KW * CIN_PAD            # 72: K padded to sublane-aligned 8-channel slots

    # --------- conv stem inputs (transposed / channel-padded, bf16 stream) --------
    xp = jnp.pad(x_nchw.astype(jnp.float32),
                 ((0, 0), (0, CIN_PAD - Cin), (1, 1), (1, 1)))        # (B, 8, H+2, W+2)
    xp = jnp.transpose(xp, (0, 2, 1, 3)).astype(jnp.bfloat16)         # (B, H+2, 8, W+2)

    w_t = jnp.pad(conv_w.astype(jnp.float32),
                  ((0, 0), (0, 0), (0, CIN_PAD - Cin), (0, 0)))       # (3, 3, 8, Cout)
    w_t = jnp.transpose(w_t.reshape(Kp, Cout)).astype(jnp.bfloat16)   # (Cout, 72)
    b_col = conv_b.reshape(Cout, 1).astype(jnp.float32)

    # Cout tile: second "parallel" grid axis keeps both v7x TensorCores busy even at
    # B=1 and bounds the per-row (tn, W) intermediate. num_features=2048 -> tn=256.
    tn = 256 if Cout % 256 == 0 else (128 if Cout % 128 == 0 else Cout)
    grid_conv = (B, Cout // tn)

    conv_cost = pl.CostEstimate(
        flops=int(2 * B * HW * Cout * (Kp + 1)),
        transcendentals=0,
        bytes_accessed=int(2 * B * (H + 2) * CIN_PAD * (W + 2)
                           + 2 * B * Kp * Cout + 4 * Cout + 4 * B * Cout))

    pooled = pl.pallas_call(
        functools.partial(_conv_relu_pool_kernel, H=H, W=W, inv_hw=1.0 / HW),
        out_shape=jax.ShapeDtypeStruct((B, Cout, 1), jnp.float32),
        grid=grid_conv,
        in_specs=[
            # whole padded image; block index is constant along the inner Cout axis
            # so it stays VMEM-resident.  (On v5e one could add
            # pipeline_mode=pl.Buffered(3) here to deepen the input pipeline.)
            pl.BlockSpec((None, H + 2, CIN_PAD, W + 2), lambda b, n: (b, 0, 0, 0)),
            pl.BlockSpec((tn, Kp), lambda b, n: (n, 0)),      # weight tile (streamed)
            pl.BlockSpec((tn, 1), lambda b, n: (n, 0)),       # bias tile
        ],
        out_specs=pl.BlockSpec((None, tn, 1), lambda b, n: (b, n, 0)),
        compiler_params=pltpu.CompilerParams(
            dimension_semantics=("parallel", "parallel"),
            vmem_limit_bytes=32 * 1024 * 1024),               # explicit VMEM budget
        cost_estimate=conv_cost,
    )(xp, w_t, b_col)
    pooled = pooled.reshape(B, Cout)

    # --------- ECA + classifier head (lane-dense output, batch padded/tiled) ------
    ncp = _round_up(num_classes, 128)             # pad classes 33 -> 128: dense vst
    w2p = jnp.pad(w2, ((0, 0), (0, ncp - num_classes))).astype(jnp.bfloat16)
    b2p = jnp.pad(b2.astype(jnp.float32), ((0, 0), (0, ncp - num_classes)))

    tb = min(128, _round_up(B, 8))                # batch tile
    bp = _round_up(_round_up(B, 8), tb)           # pad batch -> no dropped tail rows
    pooled_p = jnp.pad(pooled, ((0, bp - B), (0, 0)))
    grid_head = (bp // tb,)

    head_cost = pl.CostEstimate(
        flops=int(2 * bp * (Cout * hidden + hidden * ncp) + 8 * bp * Cout),
        transcendentals=int(bp * Cout),
        bytes_accessed=int(4 * bp * Cout + 2 * Cout * hidden + 4 * hidden
                           + 2 * hidden * ncp + 4 * ncp + 4 * bp * ncp))

    logits_padded = pl.pallas_call(
        _head_kernel,
        out_shape=jax.ShapeDtypeStruct((bp, ncp), jnp.float32),
        grid=grid_head,
        in_specs=[
            pl.BlockSpec((tb, Cout), lambda i: (i, 0)),                 # pooled feats
            pl.BlockSpec(memory_space=pltpu.MemorySpace.SMEM),          # 3 ECA taps
            pl.BlockSpec((Cout, hidden), lambda i: (0, 0)),             # W1 (bf16)
            pl.BlockSpec((1, hidden), lambda i: (0, 0)),                # b1
            pl.BlockSpec((hidden, ncp), lambda i: (0, 0)),              # W2 (padded)
            pl.BlockSpec((1, ncp), lambda i: (0, 0)),                   # b2 (padded)
        ],
        out_specs=pl.BlockSpec((tb, ncp), lambda i: (i, 0)),
        compiler_params=pltpu.CompilerParams(
            dimension_semantics=("parallel",),
            vmem_limit_bytes=32 * 1024 * 1024),
        cost_estimate=head_cost,
    )(pooled_p, eca_w.astype(jnp.float32), w1.astype(jnp.bfloat16),
      b1.astype(jnp.float32), w2p, b2p)

    return logits_padded[:B, :num_classes]


# ----------------------------- pure-JAX reference ----------------------------

def reference_forward(x_nchw, conv_w, conv_b, eca_w, w1, b1, w2, b2):
    B, Cin, H, W = x_nchw.shape
    Cout = conv_w.shape[-1]
    x = jnp.transpose(x_nchw, (0, 2, 3, 1))
    xp = jnp.pad(x, ((0, 0), (1, 1), (1, 1), (0, 0)))
    acc = jnp.zeros((B, H, W, Cout), jnp.float32)
    for kh in range(3):
        for kw in range(3):
            acc += jnp.einsum('bhwc,cd->bhwd', xp[:, kh:kh + H, kw:kw + W, :],
                              conv_w[kh, kw])
    fmap = jnp.maximum(acc + conv_b[0], 0.0)
    pooled = fmap.mean(axis=(1, 2))
    pz = jnp.pad(pooled, ((0, 0), (1, 1)))
    pre = eca_w[0] * pz[:, :-2] + eca_w[1] * pz[:, 1:-1] + eca_w[2] * pz[:, 2:]
    feat = pooled * jax.nn.sigmoid(pre)
    h = jnp.maximum(feat @ w1 + b1, 0.0)
    return h @ w2 + b2


# ------------------------------- driver -------------------------------------

if __name__ == "__main__":
    B, Cin, H, W = 2, 3, 16, 16
    num_features = 128           # scaled-down stand-in for backbone.num_features (2048)
    hidden = 256
    num_secondary_classes = 33

    key = jax.random.PRNGKey(0)
    ks = jax.random.split(key, 8)
    x = jax.random.normal(ks[0], (B, Cin, H, W), jnp.float32)       # NCHW, like PyTorch
    conv_w = 0.10 * jax.random.normal(ks[1], (3, 3, Cin, num_features), jnp.float32)
    conv_b = 0.10 * jax.random.normal(ks[2], (1, num_features), jnp.float32)
    eca_w = 0.50 * jax.random.normal(ks[3], (3,), jnp.float32)
    w1 = 0.05 * jax.random.normal(ks[4], (num_features, hidden), jnp.float32)
    b1 = 0.05 * jax.random.normal(ks[5], (1, hidden), jnp.float32)
    w2 = 0.05 * jax.random.normal(ks[6], (hidden, num_secondary_classes), jnp.float32)
    b2 = 0.05 * jax.random.normal(ks[7], (1, num_secondary_classes), jnp.float32)

    logits = clothing_classifier_forward(x, conv_w, conv_b, eca_w, w1, b1, w2, b2)
    logits = jax.block_until_ready(logits)

    ref = reference_forward(x, conv_w, conv_b, eca_w, w1, b1, w2, b2)
    assert logits.shape == (B, num_secondary_classes), logits.shape
    max_err = float(jnp.max(jnp.abs(logits - ref)))
    # bf16 MXU operands (f32 accumulation) => slightly looser tolerance than pure f32.
    assert max_err < 2e-2, f"max abs error vs f32 reference: {max_err}"
    print("KERNEL_OK")
</pallas_src>

<mosaic_0001>
module attributes {stable_mosaic.version = 11 : i64} {
  func.func @_conv_relu_pool_kernel(%arg0: i32, %arg1: i32, %arg2: memref<1x18x8x18xbf16, #tpu.memory_space<vmem>>, %arg3: memref<128x72xbf16, #tpu.memory_space<vmem>>, %arg4: memref<128x1xf32, #tpu.memory_space<vmem>>, %arg5: memref<1x128x1xf32, #tpu.memory_space<vmem>>) attributes {dimension_semantics = [#tpu.dimension_semantics<parallel>, #tpu.dimension_semantics<parallel>], iteration_bounds = array<i64: 2, 1>, scalar_prefetch = 0 : i64, scratch_operands = 0 : i64, tpu.core_type = #tpu.core_type<tc>, window_params = [{transform_indices = @transform_0, window_bounds = array<i64: 1, 18, 8, 18>}, {transform_indices = @transform_1, window_bounds = array<i64: 128, 72>}, {transform_indices = @transform_2, window_bounds = array<i64: 128, 1>}, {transform_indices = @transform_3, window_bounds = array<i64: 1, 128, 1>}]} {
    %cst = arith.constant 1.000000e+00 : f32
    %0 = vector.broadcast %cst : f32 to vector<16x1xf32>
    %cst_0 = arith.constant 0.000000e+00 : f32
    %1 = vector.broadcast %cst_0 : f32 to vector<128x1xf32>
    %c0 = arith.constant 0 : index
    %c0_1 = arith.constant 0 : index
    %c0_2 = arith.constant 0 : index
    %2 = vector.load %arg5[%c0, %c0_1, %c0_2] : memref<1x128x1xf32, #tpu.memory_space<vmem>>, vector<1x128x1xf32>
    %3 = vector.shape_cast %2 : vector<1x128x1xf32> to vector<128x1xf32>
    %4 = vector.shape_cast %1 : vector<128x1xf32> to vector<1x128x1xf32>
    tpu.vector_store %arg5[%c0, %c0_1, %c0_2], %4 {strides = array<i32>} : memref<1x128x1xf32, #tpu.memory_space<vmem>>, vector<1x128x1xf32>,
    %c0_i32 = arith.constant 0 : i32
    %c16_i32 = arith.constant 16 : i32
    %5 = arith.addi %c0_i32, %c16_i32 : i32
    %c1_i32 = arith.constant 1 : i32
    scf.for %arg6 = %c0_i32 to %5 step %c1_i32  : i32 {
      %c1_i32_11 = arith.constant 1 : i32
      %13 = arith.muli %arg6, %c1_i32_11 : i32
      %c0_i32_12 = arith.constant 0 : i32
      %14 = arith.addi %c0_i32_12, %13 : i32
      %c0_i32_13 = arith.constant 0 : i32
      %15 = arith.addi %14, %c0_i32_13 : i32
      %c0_14 = arith.constant 0 : index
      %16 = arith.index_cast %15 : i32 to index
      %c0_15 = arith.constant 0 : index
      %c0_16 = arith.constant 0 : index
      %17 = vector.load %arg2[%c0_14, %16, %c0_15, %c0_16] : memref<1x18x8x18xbf16, #tpu.memory_space<vmem>>, vector<1x1x8x18xbf16>
      %18 = vector.shape_cast %17 : vector<1x1x8x18xbf16> to vector<8x18xbf16>
      %19 = arith.extf %18 : vector<8x18xbf16> to vector<8x18xf32>
      %20 = vector.extract_strided_slice %19 {offsets = [0, 0], sizes = [8, 16], strides = [1, 1]} : vector<8x18xf32> to vector<8x16xf32>
      %21 = vector.extract_strided_slice %19 {offsets = [0, 1], sizes = [8, 16], strides = [1, 1]} : vector<8x18xf32> to vector<8x16xf32>
      %22 = vector.extract_strided_slice %19 {offsets = [0, 2], sizes = [8, 16], strides = [1, 1]} : vector<8x18xf32> to vector<8x16xf32>
      %c1_i32_17 = arith.constant 1 : i32
      %23 = arith.addi %14, %c1_i32_17 : i32
      %c0_18 = arith.constant 0 : index
      %24 = arith.index_cast %23 : i32 to index
      %c0_19 = arith.constant 0 : index
      %c0_20 = arith.constant 0 : index
      %25 = vector.load %arg2[%c0_18, %24, %c0_19, %c0_20] : memref<1x18x8x18xbf16, #tpu.memory_space<vmem>>, vector<1x1x8x18xbf16>
      %26 = vector.shape_cast %25 : vector<1x1x8x18xbf16> to vector<8x18xbf16>
      %27 = arith.extf %26 : vector<8x18xbf16> to vector<8x18xf32>
      %28 = vector.extract_strided_slice %27 {offsets = [0, 0], sizes = [8, 16], strides = [1, 1]} : vector<8x18xf32> to vector<8x16xf32>
      %29 = vector.extract_strided_slice %27 {offsets = [0, 1], sizes = [8, 16], strides = [1, 1]} : vector<8x18xf32> to vector<8x16xf32>
      %30 = vector.extract_strided_slice %27 {offsets = [0, 2], sizes = [8, 16], strides = [1, 1]} : vector<8x18xf32> to vector<8x16xf32>
      %c2_i32 = arith.constant 2 : i32
      %31 = arith.addi %14, %c2_i32 : i32
      %c0_21 = arith.constant 0 : index
      %32 = arith.index_cast %31 : i32 to index
      %c0_22 = arith.constant 0 : index
      %c0_23 = arith.constant 0 : index
      %33 = vector.load %arg2[%c0_21, %32, %c0_22, %c0_23] : memref<1x18x8x18xbf16, #tpu.memory_space<vmem>>, vector<1x1x8x18xbf16>
      %34 = vector.shape_cast %33 : vector<1x1x8x18xbf16> to vector<8x18xbf16>
      %35 = arith.extf %34 : vector<8x18xbf16> to vector<8x18xf32>
      %36 = vector.extract_strided_slice %35 {offsets = [0, 0], sizes = [8, 16], strides = [1, 1]} : vector<8x18xf32> to vector<8x16xf32>
      %37 = vector.extract_strided_slice %35 {offsets = [0, 1], sizes = [8, 16], strides = [1, 1]} : vector<8x18xf32> to vector<8x16xf32>
      %38 = vector.extract_strided_slice %35 {offsets = [0, 2], sizes = [8, 16], strides = [1, 1]} : vector<8x18xf32> to vector<8x16xf32>
      %39 = tpu.concatenate %20, %21, %22, %28, %29, %30, %36, %37, %38 in 0 : vector<8x16xf32>, vector<8x16xf32>, vector<8x16xf32>, vector<8x16xf32>, vector<8x16xf32>, vector<8x16xf32>, vector<8x16xf32>, vector<8x16xf32>, vector<8x16xf32> -> vector<72x16xf32>
      %c0_24 = arith.constant 0 : index
      %c0_25 = arith.constant 0 : index
      %40 = vector.load %arg3[%c0_24, %c0_25] : memref<128x72xbf16, #tpu.memory_space<vmem>>, vector<128x72xbf16>
      %41 = arith.truncf %39 : vector<72x16xf32> to vector<72x16xbf16>
      %cst_26 = arith.constant dense<0.000000e+00> : vector<128x16xf32>
      %42 = tpu.matmul %40, %41, %cst_26 {dimension_numbers = #tpu.dot_dimension_numbers<[1], [0], [0], [1], [0, 0, 1, 1], [], []>} : vector<128x72xbf16>, vector<72x16xbf16>, vector<128x16xf32> -> vector<128x16xf32>
      %c0_27 = arith.constant 0 : index
      %c0_28 = arith.constant 0 : index
      %43 = vector.load %arg4[%c0_27, %c0_28] : memref<128x1xf32, #tpu.memory_space<vmem>>, vector<128x1xf32>
      %44 = vector.broadcast %43 : vector<128x1xf32> to vector<128x16xf32>
      %45 = arith.addf %42, %44 : vector<128x16xf32>
      %cst_29 = arith.constant 0.000000e+00 : f32
      %46 = vector.broadcast %cst_29 : f32 to vector<128x16xf32>
      %47 = arith.maximumf %45, %46 : vector<128x16xf32>
      %c0_30 = arith.constant 0 : index
      %c0_31 = arith.constant 0 : index
      %c0_32 = arith.constant 0 : index
      %48 = vector.load %arg5[%c0_30, %c0_31, %c0_32] : memref<1x128x1xf32, #tpu.memory_space<vmem>>, vector<1x128x1xf32>
      %49 = vector.shape_cast %48 : vector<1x128x1xf32> to vector<128x1xf32>
      %cst_33 = arith.constant dense<0.000000e+00> : vector<128x1xf32>
      %50 = tpu.matmul %47, %0, %cst_33 {dimension_numbers = #tpu.dot_dimension_numbers<[1], [0], [0], [1], [0, 0, 1, 1], [], []>} : vector<128x16xf32>, vector<16x1xf32>, vector<128x1xf32> -> vector<128x1xf32>
      %51 = arith.addf %49, %50 : vector<128x1xf32>
      %c0_34 = arith.constant 0 : index
      %c0_35 = arith.constant 0 : index
      %c0_36 = arith.constant 0 : index
      %52 = vector.load %arg5[%c0_34, %c0_35, %c0_36] : memref<1x128x1xf32, #tpu.memory_space<vmem>>, vector<1x128x1xf32>
      %53 = vector.shape_cast %52 : vector<1x128x1xf32> to vector<128x1xf32>
      %54 = vector.shape_cast %51 : vector<128x1xf32> to vector<1x128x1xf32>
      tpu.vector_store %arg5[%c0_34, %c0_35, %c0_36], %54 {strides = array<i32>} : memref<1x128x1xf32, #tpu.memory_space<vmem>>, vector<1x128x1xf32>,
    }
    %c16_i32_3 = arith.constant 16 : i32
    %c0_4 = arith.constant 0 : index
    %c0_5 = arith.constant 0 : index
    %c0_6 = arith.constant 0 : index
    %6 = vector.load %arg5[%c0_4, %c0_5, %c0_6] : memref<1x128x1xf32, #tpu.memory_space<vmem>>, vector<1x128x1xf32>
    %7 = vector.shape_cast %6 : vector<1x128x1xf32> to vector<128x1xf32>
    %cst_7 = arith.constant 3.906250e-03 : f32
    %8 = vector.broadcast %cst_7 : f32 to vector<128x1xf32>
    %9 = arith.mulf %7, %8 : vector<128x1xf32>
    %c0_8 = arith.constant 0 : index
    %c0_9 = arith.constant 0 : index
    %c0_10 = arith.constant 0 : index
    %10 = vector.load %arg5[%c0_8, %c0_9, %c0_10] : memref<1x128x1xf32, #tpu.memory_space<vmem>>, vector<1x128x1xf32>
    %11 = vector.shape_cast %10 : vector<1x128x1xf32> to vector<128x1xf32>
    %12 = vector.shape_cast %9 : vector<128x1xf32> to vector<1x128x1xf32>
    tpu.vector_store %arg5[%c0_8, %c0_9, %c0_10], %12 {strides = array<i32>} : memref<1x128x1xf32, #tpu.memory_space<vmem>>, vector<1x128x1xf32>,
    return
  }
  func.func @transform_0(%arg0: i32, %arg1: i32) -> (i32, i32, i32, i32) {
    %c0_i32 = arith.constant 0 : i32
    %c0_i32_0 = arith.constant 0 : i32
    %c0_i32_1 = arith.constant 0 : i32
    %c0_i32_2 = arith.constant 0 : i32
    return %arg0, %c0_i32, %c0_i32_0, %c0_i32_1 : i32, i32, i32, i32
  }
  func.func @transform_1(%arg0: i32, %arg1: i32) -> (i32, i32) {
    %c0_i32 = arith.constant 0 : i32
    %c0_i32_0 = arith.constant 0 : i32
    return %arg1, %c0_i32 : i32, i32
  }
  func.func @transform_2(%arg0: i32, %arg1: i32) -> (i32, i32) {
    %c0_i32 = arith.constant 0 : i32
    %c0_i32_0 = arith.constant 0 : i32
    return %arg1, %c0_i32 : i32, i32
  }
  func.func @transform_3(%arg0: i32, %arg1: i32) -> (i32, i32, i32) {
    %c0_i32 = arith.constant 0 : i32
    %c0_i32_0 = arith.constant 0 : i32
    return %arg0, %arg1, %c0_i32 : i32, i32, i32
  }
}

</mosaic_0001>

<bundles_post_ra>
// kernel: tpu_custom_call.1
= control target key start
LH: loop header
LB: loop body
LE: loop exit
PB: predicated region body
PF: predicated region fallthrough
CT: control target
= control target key end

     0   :  { %s1251_s12 = smov 0   ;;  %s1253_s13 = smov 0   ;;  %s1527_s0 = inlined_call_operand.vmem [shape: bf16[2,18,8,18], index: 0, kind: input, shape index: {}]   ;;  %s1528_s1 = inlined_call_operand.vmem [shape: bf16[128,72], index: 1, kind: input, shape index: {}]   ;;  %s1529_s2 = inlined_call_operand.vmem [shape: f32[128,1], index: 2, kind: input, shape index: {}]   ;;  %s1530_s3 = inlined_call_operand.vmem [shape: f32[2,128,1], index: 3, kind: output, shape index: {}]  }
   0x1   :  { %s1255_s14 = smov 0  }
   0x2 LB: > { %s25_s15 = sadd.s32 1, %s1216_s13  ;;  %p1016_p0 = scmp.ge.s32.totalorder %s1220_s14, 1  ;;  %s1220_s14 = sphi %s1255_s14, %s13_s14   ;;  %s1216_s13 = sphi %s1253_s13, %s1532_s13   ;;  %s1212_s12 = sphi %s1251_s12, %s1531_s12  }
   0x3   : > { %p27_p1 = scmp.ge.s32.totalorder %s25_s15, 2  ;;  %p173_p2 = scmp.lt.s32.totalorder %s1220_s14, 3 }
   0x5   : > { %s1534_s15 = smov (%p27_p1, %s25_s15), 0  ;;  %p174_p3 = pnand %p1016_p0, %p173_p2 }
   0x6   : > { %p211_p4 = scmp.lt.s32.totalorder (!%p174_p3), %s1212_s12, 1  ;;  %s1311_s24 = smov (!%p174_p3), 0  }
   0x7   : > { %177 = sbr.rel (%p174_p3) target bundleno = 604 (0x25c), region = 32 }
   0xc   : > { %s1536_s12 = smov (!%p211_p4, %s1212_s12), 1  ;;  %vm239_vm0 = vcmask 7168   ;;  %v1226_v0 = vmov 0.0  }
   0xd   : > { %s1146_s16 = smul.u32 72, %s1536_s12  ;;  %s1059_s17 = sshll.u32 %s1536_s12, 7 }
   0xe   : > { %s1272_s20 = scalar_lea.vmem %s1530_s3, %s1059_s17 }
   0xf   : > { %s1277_s23 = scalar_lea.vmem %s1527_s0, %s1146_s16  ;;  %240 = vst.msk [vmem:[%s1272_s20] sm:$0xff] %vm239_vm0, %v1226_v0  ;;  %241 = vst.msk [vmem:[%s1272_s20 + $0x8] sm:$0xff] %vm239_vm0, %v1226_v0 }
  0x10   : > { %242 = vst.msk [vmem:[%s1272_s20 + $0x10] sm:$0xff] %vm239_vm0, %v1226_v0  ;;  %243 = vst.msk [vmem:[%s1272_s20 + $0x18] sm:$0xff] %vm239_vm0, %v1226_v0 }
  0x11   : > { %244 = vst.msk [vmem:[%s1272_s20 + $0x20] sm:$0xff] %vm239_vm0, %v1226_v0  ;;  %245 = vst.msk [vmem:[%s1272_s20 + $0x28] sm:$0xff] %vm239_vm0, %v1226_v0 }
  0x12   : > { %246 = vst.msk [vmem:[%s1272_s20 + $0x30] sm:$0xff] %vm239_vm0, %v1226_v0  ;;  %247 = vst.msk [vmem:[%s1272_s20 + $0x38] sm:$0xff] %vm239_vm0, %v1226_v0 }
  0x13   : > { %248 = vst.msk [vmem:[%s1272_s20 + $0x40] sm:$0xff] %vm239_vm0, %v1226_v0  ;;  %249 = vst.msk [vmem:[%s1272_s20 + $0x48] sm:$0xff] %vm239_vm0, %v1226_v0 }
  0x14   : > { %250 = vst.msk [vmem:[%s1272_s20 + $0x50] sm:$0xff] %vm239_vm0, %v1226_v0  ;;  %251 = vst.msk [vmem:[%s1272_s20 + $0x58] sm:$0xff] %vm239_vm0, %v1226_v0 }
  0x15   : > { %252 = vst.msk [vmem:[%s1272_s20 + $0x60] sm:$0xff] %vm239_vm0, %v1226_v0  ;;  %253 = vst.msk [vmem:[%s1272_s20 + $0x68] sm:$0xff] %vm239_vm0, %v1226_v0 }
  0x16   : > { %254 = vst.msk [vmem:[%s1272_s20 + $0x70] sm:$0xff] %vm239_vm0, %v1226_v0  ;;  %255 = vst.msk [vmem:[%s1272_s20 + $0x78] sm:$0xff] %vm239_vm0, %v1226_v0 }
  0x17 LB: >> { %s1020_s25 = sshll.u32 %s1224_s24, 2  ;;  %s1227_s27 = smov 126   ;;  %v1186_v6 = vld [vmem:[%s1528_s1] sm:$0xff]   ;;  %vm454_vm1 = vcmask 588800   ;;  %v319_v7 = vld [vmem:[%s1529_s2 + $0x8] sm:$0xff]  ;;  %v1229_v9 = vmov 0   ;;  %s1224_s24 = sphi %s1311_s24, %s261_s24  }
  0x18   : >> { %s263_s26 = scalar_lea.vmem %s1277_s23, %s1020_s25  ;;  %s1228_s28 = smov 127   ;;  %1101 = vmatprep.mubr.msk.bf16.mxu0 %vm454_vm1, %v1186_v6  ;;  %v318_v8 = vld [vmem:[%s1529_s2] sm:$0xff]  ;;  %1185 = vset.pattern.permute.xlu1 %v1229_v9  ;;  %v320_v10 = vld [vmem:[%s1529_s2 + $0x10] sm:$0xff]  ;;  %v321_v11 = vld [vmem:[%s1529_s2 + $0x18] sm:$0xff]  ;;  %vm479_vm2 = vcmask 1043456   ;;  %v1230_v43 = vmov 1.0  }
  0x19   : >> { %v1024_v1 = vld [vmem:[%s263_s26 + $0x4] sm:$0xff]   ;;  %v264_v4 = vld [vmem:[%s263_s26] sm:$0xf]  ;;  %1184 = vset.pattern.permute.xlu0 %v1229_v9  ;;  %v324_v14 = vld [vmem:[%s1529_s2 + $0x30] sm:$0xff]  ;;  %1117 = vmatprep.subr.mxu1 %v1230_v43  ;;  %vm612_vm3 = vcmask 130048   ;;  %s261_s24 = sadd.s32 1, %s1224_s24  }
  0x1a   : >> { %v275_v2 = vunpack.c.h.bf16 %v1024_v1  ;;  %v1318_v3 = vunpack.c.l.bf16 %v1024_v1  ;;  %v265_v5 = vunpack.c.l.bf16 %v264_v4  ;;  %v322_v12 = vld [vmem:[%s1529_s2 + $0x20] sm:$0xff]  ;;  %v323_v13 = vld [vmem:[%s1529_s2 + $0x28] sm:$0xff]  ;;  %v325_v15 = vld [vmem:[%s1529_s2 + $0x38] sm:$0xff]  ;;  %1118 = vmatpush3.msra.mxu1 %v1230_v43  ;;  %p258_p5 = scmp.ge.s32.totalorder %s261_s24, 16  }
  0x1b   : >> { %v326_v16 = vld [vmem:[%s1529_s2 + $0x40] sm:$0xff]  ;;  %v327_v17 = vld [vmem:[%s1529_s2 + $0x48] sm:$0xff]  ;;  %v328_v18 = vld [vmem:[%s1529_s2 + $0x50] sm:$0xff]  ;;  %1119 = vmatprep.subr.mxu1 %v1230_v43 }
  0x1c   : >> { %294 = vrot.lane.b32.xlu0 %v275_v2, %s1227_s27  ;;  %284 = vrot.lane.b32.xlu1 %v1318_v3, %s1228_s28  ;;  %v329_v19 = vld [vmem:[%s1529_s2 + $0x58] sm:$0xff]  ;;  %v330_v20 = vld [vmem:[%s1529_s2 + $0x60] sm:$0xff] }
  0x1d   : >> { %v331_v21 = vld [vmem:[%s1529_s2 + $0x68] sm:$0xff]  ;;  %v332_v22 = vld [vmem:[%s1529_s2 + $0x70] sm:$0xff]  ;;  %v333_v23 = vld [vmem:[%s1529_s2 + $0x78] sm:$0xff]  ;;  %1120 = vmatpush3.msra.mxu1 %v1230_v43 }
  0x1e   : >> { %v1187_v36 = vld [vmem:[%s1528_s1 + $0x8] sm:$0xff]   ;;  %v1188_v37 = vld [vmem:[%s1528_s1 + $0x10] sm:$0xff]   ;;  %v1189_v38 = vld [vmem:[%s1528_s1 + $0x18] sm:$0xff]  }
  0x1f   : >> { %v1190_v39 = vld [vmem:[%s1528_s1 + $0x20] sm:$0xff]   ;;  %v1191_v40 = vld [vmem:[%s1528_s1 + $0x28] sm:$0xff]   ;;  %v1192_v41 = vld [vmem:[%s1528_s1 + $0x30] sm:$0xff]  }
  0x20   : >> { %291 = vrot.lane.b32.xlu0 %v275_v2, %s1228_s28  ;;  %287 = vrot.lane.b32.xlu1 %v1318_v3, %s1227_s27  ;;  %v1193_v42 = vld [vmem:[%s1528_s1 + $0x38] sm:$0xff]  }
  0x24   : >> { %280 = vrot.lane.b32.xlu0 %v265_v5, %s1227_s27  ;;  %277 = vrot.lane.b32.xlu1 %v265_v5, %s1228_s28 }
  0x28   : >> { %341 = vperm.xlu1 %1185, %v319_v7   ;;  %336 = vperm.xlu0 %1184, %v318_v8  }
  0x2c   : >> { %346 = vperm.xlu1 %1185, %v320_v10   ;;  %351 = vperm.xlu0 %1184, %v321_v11  }
  0x30   : >> { %356 = vperm.xlu1 %1185, %v322_v12   ;;  %361 = vperm.xlu0 %1184, %v323_v13  }
  0x34   : >> { %366 = vperm.xlu1 %1185, %v324_v14   ;;  %371 = vperm.xlu0 %1184, %v325_v15  }
  0x38   : >> { %376 = vperm.xlu1 %1185, %v326_v16   ;;  %381 = vperm.xlu0 %1184, %v327_v17  }
  0x3c   : >> { %386 = vperm.xlu1 %1185, %v328_v18   ;;  %391 = vperm.xlu0 %1184, %v329_v19  }
  0x40   : >> { %396 = vperm.xlu1 %1185, %v330_v20   ;;  %401 = vperm.xlu0 %1184, %v331_v21  }
  0x44   : >> { %406 = vperm.xlu1 %1185, %v332_v22   ;;  %411 = vperm.xlu0 %1184, %v333_v23  }
  0x8e   : >> { %v295_v24 = vpop.permute.xlu0 %294  ;;  %v285_v25 = vpop.permute.xlu1 %284 }
  0x8f   : >> { %v317_v26 = vpack.c.bf16 %v295_v24, %v295_v24 }
  0x91   : >> { %1145 = vmatprep.subr.msk.bf16.mxu0 %vm479_vm2, %v317_v26  ;;  %v481_v27 = vsel %vm479_vm2, %v317_v26, 0 }
  0x92   : >> { %1092 = vmatpush3.bf16.msra.mxu0 %v481_v27  ;;  %v292_v28 = vpop.permute.xlu0 %291  ;;  %v288_v29 = vpop.permute.xlu1 %287 }
  0x93   : >> { %v316_v30 = vpack.c.bf16 %v292_v28, %v275_v2  ;;  %v315_v31 = vpack.c.bf16 %v288_v29, %v285_v25 }
  0x95   : >> { %1093 = vmatprep.subr.bf16.mxu0 %v316_v30 }
  0x96   : >> { %1094 = vmatpush3.bf16.msra.mxu0 %v316_v30  ;;  %v281_v32 = vpop.permute.xlu0 %280  ;;  %v278_v34 = vpop.permute.xlu1 %277 }
  0x97   : >> { %1095 = vmatprep.subr.bf16.mxu0 %v315_v31  ;;  %v314_v33 = vpack.c.bf16 %v1318_v3, %v281_v32  ;;  %v313_v35 = vpack.c.bf16 %v278_v34, %v265_v5 }
  0x9a   : >> { %1096 = vmatpush3.bf16.msra.mxu0 %v315_v31 }
  0x9b   : >> { %1097 = vmatprep.subr.bf16.mxu0 %v314_v33 }
  0x9e   : >> { %1098 = vmatpush3.bf16.msra.mxu0 %v314_v33 }
  0x9f   : >> { %1099 = vmatprep.subr.bf16.mxu0 %v313_v35 }
  0xa2   : >> { %1100 = vmatpush3.bf16.msra.mxu0 %v313_v35 }
  0xa3   : >> { %v342_v44 = vpop.permute.xlu1 %341  ;;  %v337_v45 = vpop.permute.xlu0 %336 }
  0xa5   : >> { %1102 = vmatmul.mubr.msk.bf16.vlgmr.msra.gmra.mxu0 %vm454_vm1, %v1187_v36 }
  0xa6   : >> { %1105 = vmatprep.mubr.msk.bf16.mxu0 %vm454_vm1, %v1188_v37 }
  0xa7   : >> { %v347_v46 = vpop.permute.xlu1 %346  ;;  %v352_v47 = vpop.permute.xlu0 %351 }
  0xab   : >> { %v357_v48 = vpop.permute.xlu1 %356  ;;  %v362_v50 = vpop.permute.xlu0 %361 }
  0xad   : >> { %1106 = vmatmul.mubr.msk.bf16.gmra.mxu0 %vm454_vm1, %v1189_v38 }
  0xae   : >> { %1109 = vmatprep.mubr.msk.bf16.mxu0 %vm454_vm1, %v1190_v39 }
  0xaf   : >> { %v367_v54 = vpop.permute.xlu1 %366  ;;  %v372_v59 = vpop.permute.xlu0 %371 }
  0xb3   : >> { %v377_v1 = vpop.permute.xlu1 %376  ;;  %v382_v6 = vpop.permute.xlu0 %381 }
  0xb5   : >> { %1110 = vmatmul.mubr.msk.bf16.gmra.mxu0 %vm454_vm1, %v1191_v40 }
  0xb6   : >> { %1113 = vmatprep.mubr.msk.bf16.mxu0 %vm454_vm1, %v1192_v41 }
  0xb7   : >> { %v387_v11 = vpop.permute.xlu1 %386  ;;  %v392_v17 = vpop.permute.xlu0 %391 }
  0xbb   : >> { %v397_v23 = vpop.permute.xlu1 %396  ;;  %v402_v28 = vpop.permute.xlu0 %401 }
  0xbd   : >> { %1114 = vmatmul.mubr.msk.bf16.gmra.mxu0 %vm454_vm1, %v1193_v42 }
  0xbf   : >> { %v407_v33 = vpop.permute.xlu1 %406  ;;  %v412_v39 = vpop.permute.xlu0 %411 }
 0x165   : >> { %v1103_v49 = vpop.f32.mrf.mxu0 }
 0x166   : >> { %v526_v56 = vadd.f32 %v1103_v49, %v347_v46  ;;  %v596_v46 = vld [vmem:[%s1272_s20] sm:$0xff]  ;;  %v599_v49 = vld [vmem:[%s1272_s20 + $0x18] sm:$0xff] }
 0x167   : >> { %v517_v51 = vpop.f32.mrf.mxu0 }
 0x168   : >> { %v518_v52 = vadd.f32 %v517_v51, %v337_v45  ;;  %v582_v63 = vmax.f32 %v526_v56, 0.0 }
 0x169   : >> { %v1104_v53 = vpop.f32.mrf.mxu0 }
 0x16a   : >> { %v580_v55 = vmax.f32 %v518_v52, 0.0  ;;  %v529_v61 = vadd.f32 %v1104_v53, %v352_v47  ;;  %v598_v52 = vld [vmem:[%s1272_s20 + $0x10] sm:$0xff] }
 0x16b   : >> { %v520_v57 = vpop.f32.mrf.mxu0 }
 0x16c   : >> { %v521_v58 = vadd.f32 %v520_v57, %v342_v44  ;;  %1121 = vmatprep.mubr.msk.f32.mxu1 %vm612_vm3, %v580_v55  ;;  %v583_v4 = vmax.f32 %v529_v61, 0.0  ;;  %v597_v44 = vld [vmem:[%s1272_s20 + $0x8] sm:$0xff]  ;;  %v603_v61 = vld [vmem:[%s1272_s20 + $0x38] sm:$0xff] }
 0x16d   : >> { %v1107_v60 = vpop.f32.mrf.mxu0  ;;  %v601_v55 = vld [vmem:[%s1272_s20 + $0x28] sm:$0xff] }
 0x16e   : >> { %v581_v62 = vmax.f32 %v521_v58, 0.0  ;;  %v542_v7 = vadd.f32 %v1107_v60, %v367_v54  ;;  %v600_v58 = vld [vmem:[%s1272_s20 + $0x20] sm:$0xff] }
 0x16f   : >> { %v533_v0 = vpop.f32.mrf.mxu0 }
 0x170   : >> { %v534_v2 = vadd.f32 %v533_v0, %v357_v48  ;;  %1122 = vmatmul.mubr.msk.f32.vlgmr.msra.gmra.mxu1 %vm612_vm3, %v581_v62  ;;  %v586_v14 = vmax.f32 %v542_v7, 0.0  ;;  %v602_v0 = vld [vmem:[%s1272_s20 + $0x30] sm:$0xff] }
 0x171   : >> { %v1108_v3 = vpop.f32.mrf.mxu0  ;;  %1124 = vmatprep.mubr.msk.f32.mxu1 %vm612_vm3, %v582_v63 }
 0x172   : >> { %v584_v5 = vmax.f32 %v534_v2, 0.0  ;;  %v545_v12 = vadd.f32 %v1108_v3, %v372_v59  ;;  %v605_v3 = vld [vmem:[%s1272_s20 + $0x48] sm:$0xff] }
 0x173   : >> { %v536_v8 = vpop.f32.mrf.mxu0 }
 0x174   : >> { %v537_v9 = vadd.f32 %v536_v8, %v362_v50  ;;  %1125 = vmatmul.mubr.msk.f32.gmra.mxu1 %vm612_vm3, %v583_v4  ;;  %v587_v19 = vmax.f32 %v545_v12, 0.0  ;;  %v606_v12 = vld [vmem:[%s1272_s20 + $0x50] sm:$0xff] }
 0x175   : >> { %v1111_v10 = vpop.f32.mrf.mxu0  ;;  %1127 = vmatprep.mubr.msk.f32.mxu1 %vm612_vm3, %v584_v5 }
 0x176   : >> { %v585_v13 = vmax.f32 %v537_v9, 0.0  ;;  %v558_v21 = vadd.f32 %v1111_v10, %v387_v11  ;;  %v607_v9 = vld [vmem:[%s1272_s20 + $0x58] sm:$0xff] }
 0x177   : >> { %v549_v15 = vpop.f32.mrf.mxu0 }
 0x178   : >> { %v550_v16 = vadd.f32 %v549_v15, %v377_v1  ;;  %1128 = vmatmul.mubr.msk.f32.gmra.mxu1 %vm612_vm3, %v585_v13  ;;  %v590_v29 = vmax.f32 %v558_v21, 0.0  ;;  %v609_v15 = vld [vmem:[%s1272_s20 + $0x68] sm:$0xff]  ;;  %v611_v21 = vld [vmem:[%s1272_s20 + $0x78] sm:$0xff] }
 0x179   : >> { %v1112_v18 = vpop.f32.mrf.mxu0  ;;  %1130 = vmatprep.mubr.msk.f32.mxu1 %vm612_vm3, %v586_v14 }
 0x17a   : >> { %v588_v20 = vmax.f32 %v550_v16, 0.0  ;;  %v561_v26 = vadd.f32 %v1112_v18, %v392_v17  ;;  %v608_v18 = vld [vmem:[%s1272_s20 + $0x60] sm:$0xff] }
 0x17b   : >> { %v552_v22 = vpop.f32.mrf.mxu0 }
 0x17c   : >> { %v553_v24 = vadd.f32 %v552_v22, %v382_v6  ;;  %1131 = vmatmul.mubr.msk.f32.gmra.mxu1 %vm612_vm3, %v587_v19  ;;  %v591_v34 = vmax.f32 %v561_v26, 0.0  ;;  %v604_v6 = vld [vmem:[%s1272_s20 + $0x40] sm:$0xff] }
 0x17d   : >> { %v1115_v25 = vpop.f32.mrf.mxu0  ;;  %1133 = vmatprep.mubr.msk.f32.mxu1 %vm612_vm3, %v588_v20 }
 0x17e   : >> { %v589_v27 = vmax.f32 %v553_v24, 0.0  ;;  %v574_v36 = vadd.f32 %v1115_v25, %v407_v33  ;;  %v610_v24 = vld [vmem:[%s1272_s20 + $0x70] sm:$0xff] }
 0x17f   : >> { %v565_v30 = vpop.f32.mrf.mxu0 }
 0x180   : >> { %v566_v31 = vadd.f32 %v565_v30, %v397_v23  ;;  %1134 = vmatmul.mubr.msk.f32.gmra.mxu1 %vm612_vm3, %v589_v27  ;;  %v594_v42 = vmax.f32 %v574_v36, 0.0 }
 0x181   : >> { %v1116_v32 = vpop.f32.mrf.mxu0  ;;  %1136 = vmatprep.mubr.msk.f32.mxu1 %vm612_vm3, %v590_v29 }
 0x182   : >> { %v592_v35 = vmax.f32 %v566_v31, 0.0  ;;  %v577_v40 = vadd.f32 %v1116_v32, %v412_v39 }
 0x183   : >> { %v568_v37 = vpop.f32.mrf.mxu0 }
 0x184   : >> { %v569_v38 = vadd.f32 %v568_v37, %v402_v28  ;;  %1137 = vmatmul.mubr.msk.f32.gmra.mxu1 %vm612_vm3, %v591_v34  ;;  %v595_v43 = vmax.f32 %v577_v40, 0.0 }
 0x185   : >> { %1139 = vmatprep.mubr.msk.f32.mxu1 %vm612_vm3, %v592_v35 }
 0x186   : >> { %v593_v41 = vmax.f32 %v569_v38, 0.0 }
 0x188   : >> { %1140 = vmatmul.mubr.msk.f32.gmra.mxu1 %vm612_vm3, %v593_v41 }
 0x189   : >> { %1142 = vmatprep.mubr.msk.f32.mxu1 %vm612_vm3, %v594_v42 }
 0x18c   : >> { %1143 = vmatmul.mubr.msk.f32.gmra.mxu1 %vm612_vm3, %v595_v43 }
 0x230   : >> { %v1123_v45 = vpop.f32.mrf.mxu1 }
 0x231   : >> { %v807_v47 = vadd.f32 %v1123_v45, %v597_v44 }
 0x232   : >> { %v727_v48 = vpop.f32.mrf.mxu1 }
 0x233   : >> { %823 = vst.msk [vmem:[%s1272_s20 + $0x8] sm:$0xff] %vm239_vm0, %v807_v47  ;;  %v806_v50 = vadd.f32 %v727_v48, %v596_v46 }
 0x234   : >> { %v1126_v51 = vpop.f32.mrf.mxu1 }
 0x235   : >> { %822 = vst.msk [vmem:[%s1272_s20] sm:$0xff] %vm239_vm0, %v806_v50  ;;  %v809_v53 = vadd.f32 %v1126_v51, %v599_v49 }
 0x236   : >> { %v737_v54 = vpop.f32.mrf.mxu1 }
 0x237   : >> { %825 = vst.msk [vmem:[%s1272_s20 + $0x18] sm:$0xff] %vm239_vm0, %v809_v53  ;;  %v808_v56 = vadd.f32 %v737_v54, %v598_v52 }
 0x238   : >> { %v1129_v57 = vpop.f32.mrf.mxu1 }
 0x239   : >> { %824 = vst.msk [vmem:[%s1272_s20 + $0x10] sm:$0xff] %vm239_vm0, %v808_v56  ;;  %v811_v59 = vadd.f32 %v1129_v57, %v601_v55 }
 0x23a   : >> { %v747_v60 = vpop.f32.mrf.mxu1  ;;  %v839_v29 = vld [vmem:[%s1272_s20 + $0x8] sm:$0xff] (%p258_p5) }
 0x23b   : >> { %827 = vst.msk [vmem:[%s1272_s20 + $0x28] sm:$0xff] %vm239_vm0, %v811_v59  ;;  %v810_v62 = vadd.f32 %v747_v60, %v600_v58  ;;  %v855_v32 = vmul.f32 (%p258_p5), 0.00390625, %v839_v29 }
 0x23c   : >> { %v1132_v63 = vpop.f32.mrf.mxu1  ;;  %v838_v28 = vld [vmem:[%s1272_s20] sm:$0xff] (%p258_p5) }
 0x23d   : >> { %826 = vst.msk [vmem:[%s1272_s20 + $0x20] sm:$0xff] %vm239_vm0, %v810_v62  ;;  %v813_v1 = vadd.f32 %v1132_v63, %v603_v61  ;;  %v854_v31 = vmul.f32 (%p258_p5), 0.00390625, %v838_v28  ;;  %871 = vst.msk [vmem:[%s1272_s20 + $0x8] sm:$0xff] (%p258_p5), %vm239_vm0, %v855_v32 }
 0x23e   : >> { %v757_v2 = vpop.f32.mrf.mxu1  ;;  %v841_v34 = vld [vmem:[%s1272_s20 + $0x18] sm:$0xff] (%p258_p5) }
 0x23f   : >> { %829 = vst.msk [vmem:[%s1272_s20 + $0x38] sm:$0xff] %vm239_vm0, %v813_v1  ;;  %v812_v4 = vadd.f32 %v757_v2, %v602_v0  ;;  %v857_v37 = vmul.f32 (%p258_p5), 0.00390625, %v841_v34  ;;  %870 = vst.msk [vmem:[%s1272_s20] sm:$0xff] (%p258_p5), %vm239_vm0, %v854_v31 }
 0x240   : >> { %v1135_v5 = vpop.f32.mrf.mxu1  ;;  %v840_v30 = vld [vmem:[%s1272_s20 + $0x10] sm:$0xff] (%p258_p5) }
 0x241   : >> { %828 = vst.msk [vmem:[%s1272_s20 + $0x30] sm:$0xff] %vm239_vm0, %v812_v4  ;;  %v815_v7 = vadd.f32 %v1135_v5, %v605_v3  ;;  %v856_v33 = vmul.f32 (%p258_p5), 0.00390625, %v840_v30  ;;  %873 = vst.msk [vmem:[%s1272_s20 + $0x18] sm:$0xff] (%p258_p5), %vm239_vm0, %v857_v37 }
 0x242   : >> { %v767_v8 = vpop.f32.mrf.mxu1  ;;  %v843_v36 = vld [vmem:[%s1272_s20 + $0x28] sm:$0xff] (%p258_p5) }
 0x243   : >> { %831 = vst.msk [vmem:[%s1272_s20 + $0x48] sm:$0xff] %vm239_vm0, %v815_v7  ;;  %v814_v10 = vadd.f32 %v767_v8, %v604_v6  ;;  %v859_v39 = vmul.f32 (%p258_p5), 0.00390625, %v843_v36  ;;  %872 = vst.msk [vmem:[%s1272_s20 + $0x10] sm:$0xff] (%p258_p5), %vm239_vm0, %v856_v33 }
 0x244   : >> { %v1138_v11 = vpop.f32.mrf.mxu1  ;;  %v842_v35 = vld [vmem:[%s1272_s20 + $0x20] sm:$0xff] (%p258_p5) }
 0x245   : >> { %830 = vst.msk [vmem:[%s1272_s20 + $0x40] sm:$0xff] %vm239_vm0, %v814_v10  ;;  %v817_v13 = vadd.f32 %v1138_v11, %v607_v9  ;;  %v858_v38 = vmul.f32 (%p258_p5), 0.00390625, %v842_v35  ;;  %875 = vst.msk [vmem:[%s1272_s20 + $0x28] sm:$0xff] (%p258_p5), %vm239_vm0, %v859_v39 }
 0x246   : >> { %v777_v14 = vpop.f32.mrf.mxu1  ;;  %v845_v41 = vld [vmem:[%s1272_s20 + $0x38] sm:$0xff] (%p258_p5) }
 0x247   : >> { %833 = vst.msk [vmem:[%s1272_s20 + $0x58] sm:$0xff] %vm239_vm0, %v817_v13  ;;  %v816_v16 = vadd.f32 %v777_v14, %v606_v12  ;;  %v861_v44 = vmul.f32 (%p258_p5), 0.00390625, %v845_v41  ;;  %874 = vst.msk [vmem:[%s1272_s20 + $0x20] sm:$0xff] (%p258_p5), %vm239_vm0, %v858_v38 }
 0x248   : >> { %v1141_v17 = vpop.f32.mrf.mxu1  ;;  %v844_v40 = vld [vmem:[%s1272_s20 + $0x30] sm:$0xff] (%p258_p5) }
 0x249   : >> { %832 = vst.msk [vmem:[%s1272_s20 + $0x50] sm:$0xff] %vm239_vm0, %v816_v16  ;;  %v819_v19 = vadd.f32 %v1141_v17, %v609_v15  ;;  %v860_v43 = vmul.f32 (%p258_p5), 0.00390625, %v844_v40  ;;  %877 = vst.msk [vmem:[%s1272_s20 + $0x38] sm:$0xff] (%p258_p5), %vm239_vm0, %v861_v44 }
 0x24a   : >> { %v787_v20 = vpop.f32.mrf.mxu1  ;;  %v847_v46 = vld [vmem:[%s1272_s20 + $0x48] sm:$0xff] (%p258_p5) }
 0x24b   : >> { %835 = vst.msk [vmem:[%s1272_s20 + $0x68] sm:$0xff] %vm239_vm0, %v819_v19  ;;  %v818_v22 = vadd.f32 %v787_v20, %v608_v18  ;;  %v863_v49 = vmul.f32 (%p258_p5), 0.00390625, %v847_v46  ;;  %876 = vst.msk [vmem:[%s1272_s20 + $0x30] sm:$0xff] (%p258_p5), %vm239_vm0, %v860_v43 }
 0x24c   : >> { %v1144_v23 = vpop.f32.mrf.mxu1  ;;  %v846_v42 = vld [vmem:[%s1272_s20 + $0x40] sm:$0xff] (%p258_p5) }
 0x24d   : >> { %834 = vst.msk [vmem:[%s1272_s20 + $0x60] sm:$0xff] %vm239_vm0, %v818_v22  ;;  %v821_v25 = vadd.f32 %v1144_v23, %v611_v21  ;;  %260 = sbr.rel (!%p258_p5) target bundleno = 23 (0x17), region = 78  ;;  %v862_v45 = vmul.f32 (%p258_p5), 0.00390625, %v846_v42  ;;  %879 = vst.msk [vmem:[%s1272_s20 + $0x48] sm:$0xff] (%p258_p5), %vm239_vm0, %v863_v49 }
 0x24e   : >> { %v797_v26 = vpop.f32.mrf.mxu1  ;;  %v849_v48 = vld [vmem:[%s1272_s20 + $0x58] sm:$0xff] (%p258_p5) }
 0x24f   : >> { %837 = vst.msk [vmem:[%s1272_s20 + $0x78] sm:$0xff] %vm239_vm0, %v821_v25  ;;  %v820_v27 = vadd.f32 %v797_v26, %v610_v24  ;;  %v865_v51 = vmul.f32 (%p258_p5), 0.00390625, %v849_v48  ;;  %878 = vst.msk [vmem:[%s1272_s20 + $0x40] sm:$0xff] (%p258_p5), %vm239_vm0, %v862_v45 }
 0x250   : > { %v848_v47 = vld [vmem:[%s1272_s20 + $0x50] sm:$0xff] (%p258_p5) }
 0x251   : >> { %836 = vst.msk [vmem:[%s1272_s20 + $0x70] sm:$0xff] %vm239_vm0, %v820_v27  ;;  %v864_v50 = vmul.f32 (%p258_p5), 0.00390625, %v848_v47  ;;  %881 = vst.msk [vmem:[%s1272_s20 + $0x58] sm:$0xff] (%p258_p5), %vm239_vm0, %v865_v51 }
 0x252   : > { %v851_v53 = vld [vmem:[%s1272_s20 + $0x68] sm:$0xff] }
 0x253   : > { %v867_v56 = vmul.f32 0.00390625, %v851_v53  ;;  %880 = vst.msk [vmem:[%s1272_s20 + $0x50] sm:$0xff] %vm239_vm0, %v864_v50 }
 0x254   : > { %v850_v52 = vld [vmem:[%s1272_s20 + $0x60] sm:$0xff] }
 0x255   : > { %v866_v55 = vmul.f32 0.00390625, %v850_v52  ;;  %883 = vst.msk [vmem:[%s1272_s20 + $0x68] sm:$0xff] %vm239_vm0, %v867_v56 }
 0x256   : > { %v853_v58 = vld [vmem:[%s1272_s20 + $0x78] sm:$0xff] }
 0x257   : > { %v869_v59 = vmul.f32 0.00390625, %v853_v58  ;;  %882 = vst.msk [vmem:[%s1272_s20 + $0x60] sm:$0xff] %vm239_vm0, %v866_v55 }
 0x258   : > { %v852_v54 = vld [vmem:[%s1272_s20 + $0x70] sm:$0xff] }
 0x259   : > { %v868_v57 = vmul.f32 0.00390625, %v852_v54  ;;  %885 = vst.msk [vmem:[%s1272_s20 + $0x78] sm:$0xff] %vm239_vm0, %v869_v59 }
 0x25b   : > { %884 = vst.msk [vmem:[%s1272_s20 + $0x70] sm:$0xff] %vm239_vm0, %v868_v57 }
 0x25c PF: > { %s13_s14 = sadd.s32 1, %s1220_s14   ;;  %s1531_s12 = smov %s1216_s13 }
 0x25d   : > { %p10_p6 = scmp.ge.s32.totalorder %s13_s14, 4   ;;  %s1532_s13 = smov %s1534_s15 }
 0x25f   :  { %12 = sbr.rel (!%p10_p6) target bundleno = 2 (0x2), region = 89 }

</bundles_post_ra>
